<compile_context>
chip_gen: v7x
topology: tpu7x:2x2x1
jax: 0.10.0
libtpu: 0.0.40
codegen_flags: <defaults>
</compile_context>

<pallas_src>
import functools

import jax
import jax.numpy as jnp
from jax.experimental import pallas as pl
from jax.experimental.pallas import tpu as pltpu


def _cbr_kernel(xm_ref, xh_ref, w_ref, scale_ref, shift_ref, alpha_ref, o_ref,
                col_ref):
    """One (batch, row-tile) grid step.

    xm_ref:    (1, Cin, TH*Wp)   main padded rows, channels-first, spatial flat
    xh_ref:    (1, Cin, 2*Wp)    2-row bottom halo
    w_ref:     (3*Cout, 3*Cin)   weights grouped as rows=(dx, co), cols=(dy, ci)
    scale_ref: (Cout, 1) f32     BN scale  gamma / sqrt(var + eps)
    shift_ref: (Cout, 1) f32     BN shift  beta - mean * scale
    alpha_ref: (Cout, 1) f32     PReLU slopes
    o_ref:     (1, Cout, TH*Wp)  lane-dense output tile (padded-width layout)
    col_ref:   (3*Cin, TH*Wp)    VMEM scratch: the 3 dy-shifted input slabs
    """
    _, Cin, L = xm_ref.shape
    Wp = xh_ref.shape[2] // 2
    Cout = o_ref.shape[1]

    # Build the 3 dy-shifted slabs.  All offsets are multiples of Wp and the
    # stores span the full lane width, so this is 3x (not 9x) the tile in store
    # traffic and never masks down to Cin lanes.
    col_ref[:Cin, :] = xm_ref[0]
    if L > Wp:
        col_ref[Cin:2 * Cin, :L - Wp] = xm_ref[0, :, Wp:]
    col_ref[Cin:2 * Cin, L - Wp:] = xh_ref[0, :, :Wp]
    if L > 2 * Wp:
        col_ref[2 * Cin:, :L - 2 * Wp] = xm_ref[0, :, 2 * Wp:]
    col_ref[2 * Cin:, L - 2 * Wp:] = xh_ref[0]

    # Single MXU matmul with f32 accumulation:
    #   (3*Cout, 3*Cin) . (3*Cin, TH*Wp) -> (3*Cout, TH*Wp)
    # Row block dx*Cout:(dx+1)*Cout is the conv partial that still needs a left
    # shift by dx pixels.
    y = jax.lax.dot_general(
        w_ref[...], col_ref[...],
        dimension_numbers=(((1,), (0,)), ((), ())),
        preferred_element_type=jnp.float32)

    # Combine the dx partials with two f32 lane rolls (XLU).  The 1-2 lanes that
    # wrap around only land in padded output columns >= W, which the wrapper
    # slices off.
    acc = y[:Cout]
    acc = acc + pltpu.roll(y[Cout:2 * Cout], shift=L - 1, axis=1)
    acc = acc + pltpu.roll(y[2 * Cout:], shift=L - 2, axis=1)

    # BN (eval-mode running stats) + per-channel PReLU, all in f32.
    acc = acc * scale_ref[...] + shift_ref[...]
    acc = jnp.where(acc > 0, acc, alpha_ref[...] * acc)
    o_ref[0] = acc.astype(o_ref.dtype)


def _round_up(x, m):
    return ((x + m - 1) // m) * m


def _choose_tile_rows(H, Wp, Cin, Cout, in_item, out_item,
                      vmem_budget=10 * 1024 * 1024):
    """Largest even row-tile TH whose per-step working set fits the budget.

    Per output row (Wp lanes): the 3x col slab + double-buffered input block in
    the compute dtype, plus the f32 (3*Cout) matmul result, the f32 accumulator
    and the double-buffered output block.  The 10 MiB default stays well under
    the scoped-VMEM limits of v5e/v6e and v7x's 64 MiB physical VMEM.
    """
    per_row = Wp * ((3 + 2) * Cin * in_item + Cout * (4 * 4 + 2 * out_item))
    th = min(_round_up(H, 2), max(2, vmem_budget // per_row))
    th -= th % 2
    return max(2, th)


@functools.partial(jax.jit, static_argnames=("compute_dtype", "out_dtype"))
def cbr_forward(x, conv_w, bn_gamma, bn_beta, bn_mean, bn_var, prelu_alpha,
                eps=1e-5, compute_dtype=jnp.bfloat16, out_dtype=None):
    """CBR forward: Conv2d(3x3, stride 1, pad 1, no bias) + BatchNorm2d + PReLU.

    x: (N, Cin, H, W); conv_w: (Cout, Cin, 3, 3) -- PyTorch conventions.
    Returns (N, Cout, H, W) in `out_dtype` (default: x.dtype).
    """
    N, Cin, H, W = x.shape
    Cout = conv_w.shape[0]
    cdt = jnp.dtype(compute_dtype)
    odt = jnp.dtype(out_dtype) if out_dtype is not None else x.dtype

    # Padded width: 1 px conv pad left, >=1 right, rounded up to 64 so every
    # flat-spatial block (main TH*Wp, halo 2*Wp) is a multiple of 128 lanes.
    Wp = _round_up(W + 2, 64)
    TH = _choose_tile_rows(H, Wp, Cin, Cout, cdt.itemsize, odt.itemsize)
    n_th = pl.cdiv(H, TH)
    rows = n_th * TH + 2          # 1 top pad row + H image rows + bottom pad/halo
    L = TH * Wp

    # Channels stay first (no transpose); spatial is zero-padded and flattened.
    x_pad = jnp.pad(x.astype(cdt),
                    ((0, 0), (0, 0), (1, rows - H - 1), (1, Wp - W - 1)))
    x_flat = x_pad.reshape(N, Cin, rows * Wp)

    # Weights regrouped so the dx taps ride on the MXU M dimension:
    # (Cout, Cin, dy, dx) -> (dx, Cout, dy, Cin) -> (3*Cout, 3*Cin).
    w_slab = jnp.transpose(conv_w, (3, 0, 2, 1)).reshape(3 * Cout, 3 * Cin).astype(cdt)
    scale = (bn_gamma / jnp.sqrt(bn_var + eps)).astype(jnp.float32).reshape(Cout, 1)
    shift = (bn_beta.astype(jnp.float32).reshape(Cout, 1)
             - bn_mean.astype(jnp.float32).reshape(Cout, 1) * scale)
    alpha = prelu_alpha.astype(jnp.float32).reshape(Cout, 1)

    flops = 2 * N * n_th * L * 3 * Cout * 3 * Cin
    bytes_accessed = ((N * Cin * rows * Wp + 9 * Cout * Cin) * cdt.itemsize
                      + N * Cout * n_th * L * odt.itemsize)

    out_flat = pl.pallas_call(
        _cbr_kernel,
        out_shape=jax.ShapeDtypeStruct((N, Cout, n_th * L), odt),
        grid_spec=pltpu.PrefetchScalarGridSpec(
            num_scalar_prefetch=0,
            grid=(N, n_th),
            in_specs=[
                # main rows [th*TH, th*TH + TH) of the padded image (flattened)
                pl.BlockSpec((1, Cin, L), lambda n, th: (n, 0, th)),
                # 2-row bottom halo [th*TH + TH, th*TH + TH + 2)
                pl.BlockSpec((1, Cin, 2 * Wp),
                             lambda n, th: (n, 0, (th + 1) * (TH // 2))),
                # resident parameters (constant index maps -> fetched once)
                pl.BlockSpec((3 * Cout, 3 * Cin), lambda n, th: (0, 0)),
                pl.BlockSpec((Cout, 1), lambda n, th: (0, 0)),
                pl.BlockSpec((Cout, 1), lambda n, th: (0, 0)),
                pl.BlockSpec((Cout, 1), lambda n, th: (0, 0)),
            ],
            out_specs=pl.BlockSpec((1, Cout, L), lambda n, th: (n, 0, th)),
            scratch_shapes=[
                pltpu.VMEM((3 * Cin, L), cdt),     # dy-shifted input slabs
            ]),
        compiler_params=pltpu.CompilerParams(
            dimension_semantics=("parallel", "parallel"),
            vmem_limit_bytes=32 * 1024 * 1024),
        cost_estimate=pl.CostEstimate(flops=flops, transcendentals=0,
                                      bytes_accessed=bytes_accessed),
    )(x_flat, x_flat, w_slab, scale, shift, alpha)

    # Drop padded rows/columns; channels-first throughout, so no transpose.
    out = out_flat.reshape(N, Cout, n_th * TH, Wp)[:, :, :H, :W]
    return out


def _reference(x, conv_w, bn_gamma, bn_beta, bn_mean, bn_var, prelu_alpha,
               eps=1e-5):
    """Pure-JAX reference for a correctness sanity check."""
    y = jax.lax.conv_general_dilated(
        x, conv_w, window_strides=(1, 1), padding=((1, 1), (1, 1)),
        dimension_numbers=("NCHW", "OIHW", "NCHW"))
    scale = bn_gamma / jnp.sqrt(bn_var + eps)
    y = (y * scale[None, :, None, None]
         + (bn_beta - bn_mean * scale)[None, :, None, None])
    return jnp.where(y > 0, y, prelu_alpha[None, :, None, None] * y)


if __name__ == "__main__":
    # Small shapes consistent with the module defaults (kSize=3, stride=1, groups=1).
    N, Cin, Cout, H, W = 2, 4, 8, 16, 16

    key = jax.random.PRNGKey(0)
    k_x, k_w, k_g, k_b, k_m, k_v = jax.random.split(key, 6)

    x = jax.random.normal(k_x, (N, Cin, H, W), dtype=jnp.float32)
    conv_w = 0.1 * jax.random.normal(k_w, (Cout, Cin, 3, 3), dtype=jnp.float32)
    bn_gamma = 1.0 + 0.1 * jax.random.normal(k_g, (Cout,), dtype=jnp.float32)
    bn_beta = 0.1 * jax.random.normal(k_b, (Cout,), dtype=jnp.float32)
    bn_mean = 0.1 * jax.random.normal(k_m, (Cout,), dtype=jnp.float32)
    bn_var = jnp.abs(1.0 + 0.1 * jax.random.normal(k_v, (Cout,), dtype=jnp.float32))
    prelu_alpha = jnp.full((Cout,), 0.25, dtype=jnp.float32)   # PyTorch PReLU default

    ref = _reference(x, conv_w, bn_gamma, bn_beta, bn_mean, bn_var, prelu_alpha)

    # f32 path (exact algorithm check).
    out_f32 = cbr_forward(x, conv_w, bn_gamma, bn_beta, bn_mean, bn_var,
                          prelu_alpha, compute_dtype=jnp.float32)
    out_f32 = jax.block_until_ready(out_f32)
    assert out_f32.shape == (N, Cout, H, W)
    assert out_f32.dtype == x.dtype
    assert jnp.allclose(out_f32, ref, atol=1e-4, rtol=1e-4), "f32 mismatch vs reference"

    # Default bf16 fast path: bf16 MXU operands, f32 accumulation + f32 epilogue.
    out_bf16 = cbr_forward(x, conv_w, bn_gamma, bn_beta, bn_mean, bn_var,
                           prelu_alpha)
    out_bf16 = jax.block_until_ready(out_bf16)
    assert jnp.allclose(out_bf16, ref, atol=7e-2, rtol=7e-2), "bf16 mismatch vs reference"

    print("KERNEL_OK")
</pallas_src>

<mosaic_0001>
module attributes {stable_mosaic.version = 11 : i64} {
  func.func @_cbr_kernel(%arg0: i32, %arg1: i32, %arg2: memref<1x4x1024xf32, #tpu.memory_space<vmem>>, %arg3: memref<1x4x128xf32, #tpu.memory_space<vmem>>, %arg4: memref<24x12xf32, #tpu.memory_space<vmem>>, %arg5: memref<8x1xf32, #tpu.memory_space<vmem>>, %arg6: memref<8x1xf32, #tpu.memory_space<vmem>>, %arg7: memref<8x1xf32, #tpu.memory_space<vmem>>, %arg8: memref<1x8x1024xf32, #tpu.memory_space<vmem>>, %arg9: memref<12x1024xf32, #tpu.memory_space<vmem>>) attributes {dimension_semantics = [#tpu.dimension_semantics<parallel>, #tpu.dimension_semantics<parallel>], iteration_bounds = array<i64: 2, 1>, scalar_prefetch = 0 : i64, scratch_operands = 1 : i64, tpu.core_type = #tpu.core_type<tc>, window_params = [{transform_indices = @transform_0, window_bounds = array<i64: 1, 4, 1024>}, {transform_indices = @transform_1, window_bounds = array<i64: 1, 4, 128>}, {pipeline_mode = #tpu.pipeline_mode<synchronous>, transform_indices = @transform_2, window_bounds = array<i64: 24, 12>}, {pipeline_mode = #tpu.pipeline_mode<synchronous>, transform_indices = @transform_3, window_bounds = array<i64: 8, 1>}, {pipeline_mode = #tpu.pipeline_mode<synchronous>, transform_indices = @transform_4, window_bounds = array<i64: 8, 1>}, {pipeline_mode = #tpu.pipeline_mode<synchronous>, transform_indices = @transform_5, window_bounds = array<i64: 8, 1>}, {transform_indices = @transform_6, window_bounds = array<i64: 1, 8, 1024>}]} {
    %c0 = arith.constant 0 : index
    %c0_0 = arith.constant 0 : index
    %c0_1 = arith.constant 0 : index
    %0 = vector.load %arg2[%c0, %c0_0, %c0_1] : memref<1x4x1024xf32, #tpu.memory_space<vmem>>, vector<1x4x1024xf32>
    %1 = vector.shape_cast %0 : vector<1x4x1024xf32> to vector<4x1024xf32>
    %c0_2 = arith.constant 0 : index
    %c0_3 = arith.constant 0 : index
    %2 = vector.load %arg9[%c0_2, %c0_3] : memref<12x1024xf32, #tpu.memory_space<vmem>>, vector<4x1024xf32>
    tpu.vector_store %arg9[%c0_2, %c0_3], %1 {strides = array<i32>} : memref<12x1024xf32, #tpu.memory_space<vmem>>, vector<4x1024xf32>,
    %c0_4 = arith.constant 0 : index
    %c0_5 = arith.constant 0 : index
    %c64 = arith.constant 64 : index
    %3 = vector.load %arg2[%c0_4, %c0_5, %c64] : memref<1x4x1024xf32, #tpu.memory_space<vmem>>, vector<1x4x960xf32>
    %4 = vector.shape_cast %3 : vector<1x4x960xf32> to vector<4x960xf32>
    %c4 = arith.constant 4 : index
    %c0_6 = arith.constant 0 : index
    %5 = vector.load %arg9[%c4, %c0_6] : memref<12x1024xf32, #tpu.memory_space<vmem>>, vector<4x960xf32>
    tpu.vector_store %arg9[%c4, %c0_6], %4 {strides = array<i32>} : memref<12x1024xf32, #tpu.memory_space<vmem>>, vector<4x960xf32>,
    %c0_7 = arith.constant 0 : index
    %c0_8 = arith.constant 0 : index
    %c0_9 = arith.constant 0 : index
    %6 = vector.load %arg3[%c0_7, %c0_8, %c0_9] : memref<1x4x128xf32, #tpu.memory_space<vmem>>, vector<1x4x64xf32>
    %7 = vector.shape_cast %6 : vector<1x4x64xf32> to vector<4x64xf32>
    %c4_10 = arith.constant 4 : index
    %c960 = arith.constant 960 : index
    %8 = vector.load %arg9[%c4_10, %c960] : memref<12x1024xf32, #tpu.memory_space<vmem>>, vector<4x64xf32>
    tpu.vector_store %arg9[%c4_10, %c960], %7 {strides = array<i32>} : memref<12x1024xf32, #tpu.memory_space<vmem>>, vector<4x64xf32>,
    %c0_11 = arith.constant 0 : index
    %c0_12 = arith.constant 0 : index
    %c128 = arith.constant 128 : index
    %9 = vector.load %arg2[%c0_11, %c0_12, %c128] : memref<1x4x1024xf32, #tpu.memory_space<vmem>>, vector<1x4x896xf32>
    %10 = vector.shape_cast %9 : vector<1x4x896xf32> to vector<4x896xf32>
    %c8 = arith.constant 8 : index
    %c0_13 = arith.constant 0 : index
    %11 = vector.load %arg9[%c8, %c0_13] : memref<12x1024xf32, #tpu.memory_space<vmem>>, vector<4x896xf32>
    tpu.vector_store %arg9[%c8, %c0_13], %10 {strides = array<i32>} : memref<12x1024xf32, #tpu.memory_space<vmem>>, vector<4x896xf32>,
    %c0_14 = arith.constant 0 : index
    %c0_15 = arith.constant 0 : index
    %c0_16 = arith.constant 0 : index
    %12 = vector.load %arg3[%c0_14, %c0_15, %c0_16] : memref<1x4x128xf32, #tpu.memory_space<vmem>>, vector<1x4x128xf32>
    %13 = vector.shape_cast %12 : vector<1x4x128xf32> to vector<4x128xf32>
    %c8_17 = arith.constant 8 : index
    %c896 = arith.constant 896 : index
    %14 = vector.load %arg9[%c8_17, %c896] : memref<12x1024xf32, #tpu.memory_space<vmem>>, vector<4x128xf32>
    tpu.vector_store %arg9[%c8_17, %c896], %13 {strides = array<i32>} : memref<12x1024xf32, #tpu.memory_space<vmem>>, vector<4x128xf32>,
    %c0_18 = arith.constant 0 : index
    %c0_19 = arith.constant 0 : index
    %15 = vector.load %arg4[%c0_18, %c0_19] : memref<24x12xf32, #tpu.memory_space<vmem>>, vector<24x12xf32>
    %c0_20 = arith.constant 0 : index
    %c0_21 = arith.constant 0 : index
    %16 = vector.load %arg9[%c0_20, %c0_21] : memref<12x1024xf32, #tpu.memory_space<vmem>>, vector<12x1024xf32>
    %cst = arith.constant dense<0.000000e+00> : vector<24x1024xf32>
    %17 = tpu.matmul %15, %16, %cst {dimension_numbers = #tpu.dot_dimension_numbers<[1], [0], [0], [1], [0, 0, 1, 1], [], []>} : vector<24x12xf32>, vector<12x1024xf32>, vector<24x1024xf32> -> vector<24x1024xf32>
    %18 = vector.extract_strided_slice %17 {offsets = [0, 0], sizes = [8, 1024], strides = [1, 1]} : vector<24x1024xf32> to vector<8x1024xf32>
    %19 = vector.extract_strided_slice %17 {offsets = [8, 0], sizes = [8, 1024], strides = [1, 1]} : vector<24x1024xf32> to vector<8x1024xf32>
    %c1023_i32 = arith.constant 1023 : i32
    %20 = tpu.dynamic_rotate %19 by %c1023_i32 dim 1 : vector<8x1024xf32>, i32 -> vector<8x1024xf32>
    %21 = arith.addf %18, %20 : vector<8x1024xf32>
    %22 = vector.extract_strided_slice %17 {offsets = [16, 0], sizes = [8, 1024], strides = [1, 1]} : vector<24x1024xf32> to vector<8x1024xf32>
    %c1022_i32 = arith.constant 1022 : i32
    %23 = tpu.dynamic_rotate %22 by %c1022_i32 dim 1 : vector<8x1024xf32>, i32 -> vector<8x1024xf32>
    %24 = arith.addf %21, %23 : vector<8x1024xf32>
    %c0_22 = arith.constant 0 : index
    %c0_23 = arith.constant 0 : index
    %25 = vector.load %arg5[%c0_22, %c0_23] : memref<8x1xf32, #tpu.memory_space<vmem>>, vector<8x1xf32>
    %26 = vector.broadcast %25 : vector<8x1xf32> to vector<8x1024xf32>
    %27 = arith.mulf %24, %26 : vector<8x1024xf32>
    %c0_24 = arith.constant 0 : index
    %c0_25 = arith.constant 0 : index
    %28 = vector.load %arg6[%c0_24, %c0_25] : memref<8x1xf32, #tpu.memory_space<vmem>>, vector<8x1xf32>
    %29 = vector.broadcast %28 : vector<8x1xf32> to vector<8x1024xf32>
    %30 = arith.addf %27, %29 : vector<8x1024xf32>
    %cst_26 = arith.constant 0.000000e+00 : f32
    %31 = vector.broadcast %cst_26 : f32 to vector<8x1024xf32>
    %32 = arith.cmpf ogt, %30, %31 : vector<8x1024xf32>
    %c0_27 = arith.constant 0 : index
    %c0_28 = arith.constant 0 : index
    %33 = vector.load %arg7[%c0_27, %c0_28] : memref<8x1xf32, #tpu.memory_space<vmem>>, vector<8x1xf32>
    %34 = vector.broadcast %33 : vector<8x1xf32> to vector<8x1024xf32>
    %35 = arith.mulf %34, %30 : vector<8x1024xf32>
    %36 = arith.select %32, %30, %35 : vector<8x1024xi1>, vector<8x1024xf32>
    %c0_29 = arith.constant 0 : index
    %c0_30 = arith.constant 0 : index
    %c0_31 = arith.constant 0 : index
    %37 = vector.load %arg8[%c0_29, %c0_30, %c0_31] : memref<1x8x1024xf32, #tpu.memory_space<vmem>>, vector<1x8x1024xf32>
    %38 = vector.shape_cast %37 : vector<1x8x1024xf32> to vector<8x1024xf32>
    %39 = vector.shape_cast %36 : vector<8x1024xf32> to vector<1x8x1024xf32>
    tpu.vector_store %arg8[%c0_29, %c0_30, %c0_31], %39 {strides = array<i32>} : memref<1x8x1024xf32, #tpu.memory_space<vmem>>, vector<1x8x1024xf32>,
    return
  }
  func.func @transform_0(%arg0: i32, %arg1: i32) -> (i32, i32, i32) {
    %c0_i32 = arith.constant 0 : i32
    %c0_i32_0 = arith.constant 0 : i32
    return %arg0, %c0_i32, %arg1 : i32, i32, i32
  }
  func.func @transform_1(%arg0: i32, %arg1: i32) -> (i32, i32, i32) {
    %c1_i32 = arith.constant 1 : i32
    %0 = arith.addi %arg1, %c1_i32 : i32
    %c8_i32 = arith.constant 8 : i32
    %1 = arith.muli %0, %c8_i32 : i32
    %c0_i32 = arith.constant 0 : i32
    %c0_i32_0 = arith.constant 0 : i32
    return %arg0, %c0_i32, %1 : i32, i32, i32
  }
  func.func @transform_2(%arg0: i32, %arg1: i32) -> (i32, i32) {
    %c0_i32 = arith.constant 0 : i32
    %c0_i32_0 = arith.constant 0 : i32
    %c0_i32_1 = arith.constant 0 : i32
    return %c0_i32, %c0_i32_0 : i32, i32
  }
  func.func @transform_3(%arg0: i32, %arg1: i32) -> (i32, i32) {
    %c0_i32 = arith.constant 0 : i32
    %c0_i32_0 = arith.constant 0 : i32
    %c0_i32_1 = arith.constant 0 : i32
    return %c0_i32, %c0_i32_0 : i32, i32
  }
  func.func @transform_4(%arg0: i32, %arg1: i32) -> (i32, i32) {
    %c0_i32 = arith.constant 0 : i32
    %c0_i32_0 = arith.constant 0 : i32
    %c0_i32_1 = arith.constant 0 : i32
    return %c0_i32, %c0_i32_0 : i32, i32
  }
  func.func @transform_5(%arg0: i32, %arg1: i32) -> (i32, i32) {
    %c0_i32 = arith.constant 0 : i32
    %c0_i32_0 = arith.constant 0 : i32
    %c0_i32_1 = arith.constant 0 : i32
    return %c0_i32, %c0_i32_0 : i32, i32
  }
  func.func @transform_6(%arg0: i32, %arg1: i32) -> (i32, i32, i32) {
    %c0_i32 = arith.constant 0 : i32
    %c0_i32_0 = arith.constant 0 : i32
    return %arg0, %c0_i32, %arg1 : i32, i32, i32
  }
}

</mosaic_0001>

<bundles_post_ra>
// kernel: cbr_forward.1
= control target key start
LH: loop header
LB: loop body
LE: loop exit
PB: predicated region body
PF: predicated region fallthrough
CT: control target
= control target key end

     0   :  { %s1253_s21 = smov 0   ;;  %s1255_s22 = smov 0   ;;  %s1455_s0 = inlined_call_operand.vmem [shape: f32[2,4,1152], index: 0, kind: input, shape index: {}, may-alias: {0,1}]   ;;  %s1456_s1 = inlined_call_operand.vmem [shape: f32[2,4,1152], index: 1, kind: input, shape index: {}, may-alias: {0,1}]   ;;  %s1457_s2 = inlined_call_operand.vmem [shape: f32[24,12], index: 2, kind: input, shape index: {}]   ;;  %s1458_s3 = inlined_call_operand.vmem [shape: f32[8,1], index: 3, kind: input, shape index: {}]   ;;  %s1459_s4 = inlined_call_operand.vmem [shape: f32[8,1], index: 4, kind: input, shape index: {}]   ;;  %s1460_s5 = inlined_call_operand.vmem [shape: f32[8,1], index: 5, kind: input, shape index: {}]   ;;  %s1461_s6 = inlined_call_operand.vmem [shape: f32[2,8,1024], index: 6, kind: output, shape index: {}]  }
   0x1   :  { %s1257_s23 = smov 0  }
   0x2 LB: > { %s28_s24 = sadd.s32 1, %s1206_s22  ;;  %p1092_p0 = scmp.ge.s32.totalorder %s1210_s23, 1  ;;  %s1210_s23 = sphi %s1257_s23, %s16_s23   ;;  %s1206_s22 = sphi %s1255_s22, %s1465_s22   ;;  %s1202_s21 = sphi %s1253_s21, %s1464_s21  }
   0x3   : > { %p30_p1 = scmp.ge.s32.totalorder %s28_s24, 2  ;;  %p264_p2 = scmp.lt.s32.totalorder %s1210_s23, 3 }
   0x5   : > { %s1467_s24 = smov (%p30_p1, %s28_s24), 0  ;;  %p265_p3 = pnand %p1092_p0, %p264_p2 }
   0x6   : > { %p321_p4 = scmp.lt.s32.totalorder (!%p265_p3), %s1202_s21, 1  ;;  %s1212_s30 = smov (!%p265_p3), 64   ;;  %v1213_v19 = vmov (!%p265_p3), 0.0   ;;  %v931_v23 = vld [vmem:[%s1459_s4] sm:$0xff] (!%p265_p3)  ;;  %v1214_v25 = vmov (!%p265_p3), 0   ;;  %vm408_vm0 = vcmask (!%p265_p3), 523264  }
   0x7   : > { %268 = sbr.rel (%p265_p3) target bundleno = 536 (0x218), region = 44  ;;  %581 = vmatprep.mubr.f32.mxu0 (!%p265_p3), %v1213_v19  ;;  %664 = vmatprep.mubr.f32.mxu1 (!%p265_p3), %v1213_v19  ;;  %v917_v24 = vld [vmem:[%s1458_s3] sm:$0xff] (!%p265_p3)  ;;  %vm492_vm1 = vcmask (!%p265_p3), 1043456   ;;  %vm431_vm2 = vcmask (!%p265_p3), 523268   ;;  %vm1215_vm3 = vmmov (!%p265_p3), 1   ;;  %vm439_vm5 = vcmask (!%p265_p3), 1048068  }
   0x8   : > { %1180 = vset.pattern.permute.xlu0 (!%p265_p3), %v1214_v25  ;;  %1179 = vset.pattern.permute.xlu1 (!%p265_p3), %v1214_v25  ;;  %vm1316_vm4 = vmpackc.low (!%p265_p3), %vm492_vm1, %vm1215_vm3  ;;  %v463_v55 = vld [vmem:[%s1457_s2] sm:$0xff] (!%p265_p3)  ;;  %vm482_vm6 = vcmask (!%p265_p3), 97280   ;;  %s1216_s20 = smov (!%p265_p3), 127  }
   0xe   : > { %s1469_s21 = smov (!%p321_p4, %s1202_s21), 1 }
   0xf   : > { %s1146_s25 = smul.u32 36, %s1469_s21 }
  0x11   : > { %s1277_s28 = scalar_lea.vmem %s1455_s0, %s1146_s25  ;;  %s1120_s29 = sadd.s32 32, %s1146_s25 }
  0x12   : > { %v381_v0 = vld [vmem:[%s1277_s28 + $0x8] sm:$0xff]  ;;  %v380_v1 = vld [vmem:[%s1277_s28] sm:$0xff]  ;;  %v382_v2 = vld [vmem:[%s1277_s28 + $0x10] sm:$0xff]  ;;  %s1288_s9 = scalar_lea.vmem %s1456_s1, %s1120_s29  ;;  %s1217_s25 = smov 126  }
  0x13   : > { %398 = vrot.lane.b32.xlu1 %v381_v0, %s1212_s30  ;;  %v389_v3 = vcombine.low %v381_v0, %v381_v0  ;;  %394 = vrot.lane.b32.xlu0 %v380_v1, %s1212_s30  ;;  %v390_v4 = vcombine.low %v382_v2, %v382_v2  ;;  %v383_v5 = vld [vmem:[%s1277_s28 + $0x18] sm:$0xff]  ;;  %372 = vst [vmem:[#allocation2] sm:$0xf] %v380_v1  ;;  %374 = vst [vmem:[#allocation2 + $0x10] sm:$0xf] %v381_v0  ;;  %v441_v8 = vld [vmem:[%s1277_s28 + $0x4] sm:$0xff] }
  0x14   : > { %376 = vst [vmem:[#allocation2 + $0x20] sm:$0xf] %v382_v2  ;;  %v461_v6 = vld [vmem:[%s1288_s9] sm:$0xf]  ;;  %v364_v7 = vcombine.high %v380_v1, %v380_v1  ;;  %v442_v9 = vld [vmem:[%s1277_s28 + $0xc] sm:$0xff]  ;;  %v448_v10 = vcombine.high %v441_v8, %v441_v8  ;;  %v365_v11 = vcombine.high %v381_v0, %v381_v0  ;;  %v443_v13 = vld [vmem:[%s1277_s28 + $0x14] sm:$0xff]  ;;  %v366_v14 = vcombine.high %v382_v2, %v382_v2 }
  0x15   : > { %378 = vst [vmem:[#allocation2 + $0x30] sm:$0xf] %v383_v5  ;;  %462 = vst [vmem:[#allocation2 + $0x78] sm:$0xf] %v461_v6  ;;  %v449_v12 = vcombine.high %v442_v9, %v442_v9  ;;  %v450_v15 = vcombine.high %v443_v13, %v443_v13  ;;  %v388_v16 = vcombine.low %v380_v1, %v380_v1  ;;  %v444_v18 = vld [vmem:[%s1277_s28 + $0x1c] sm:$0xf] }
  0x16   : > { %454 = vst [vmem:[#allocation2 + $0x40] sm:$0xf] %v441_v8  ;;  %456 = vst [vmem:[#allocation2 + $0x50] sm:$0xf] %v442_v9  ;;  %v367_v17 = vcombine.high %v383_v5, %v383_v5  ;;  %v391_v20 = vcombine.low %v383_v5, %v383_v5  ;;  %v433_v21 = vld [vmem:[%s1288_s9] sm:$0xf] }
  0x17   : > { %373 = vst [vmem:[#allocation2 + $0x8] sm:$0xf] %v364_v7  ;;  %458 = vst [vmem:[#allocation2 + $0x60] sm:$0xf] %v443_v13  ;;  %400 = vrot.lane.b32.xlu1 %v390_v4, %s1212_s30  ;;  %396 = vrot.lane.b32.xlu0 %v389_v3, %s1212_s30  ;;  %v435_v22 = vrot.slane %v433_v21, 4  ;;  %v464_v1 = vld [vmem:[%s1457_s2 + $0x8] sm:$0xff] }
  0x18   : > { %455 = vst [vmem:[#allocation2 + $0x48] sm:$0xf] %v448_v10  ;;  %375 = vst [vmem:[#allocation2 + $0x18] sm:$0xf] %v365_v11  ;;  %s1121_s28 = sshll.u32 %s1469_s21, 6 }
  0x19   : > { %457 = vst [vmem:[#allocation2 + $0x58] sm:$0xf] %v449_v12  ;;  %377 = vst [vmem:[#allocation2 + $0x28] sm:$0xf] %v366_v14  ;;  %s354_s7 = scalar_lea.vmem %s1461_s6, %s1121_s28 }
  0x1a   : > { %459 = vst [vmem:[#allocation2 + $0x68] sm:$0xf] %v450_v15  ;;  %379 = vst [vmem:[#allocation2 + $0x38] sm:$0xf] %v367_v17 }
  0x1b   : > { %460 = vst [vmem:[#allocation2 + $0x70] sm:$0xf] %v444_v18  ;;  %402 = vrot.lane.b32.xlu1 %v382_v2, %s1212_s30  ;;  %392 = vrot.lane.b32.xlu0 %v388_v16, %s1212_s30 }
  0x1c   : > { %v481_v63 = vld [vmem:[#allocation2 + $0x78] sm:$0xf] }
  0x1d   : > { %v476_v39 = vld [vmem:[#allocation2 + $0x50] sm:$0xf]  ;;  %v474_v51 = vld [vmem:[#allocation2 + $0x40] sm:$0xf] }
  0x1e   : > { %v478_v58 = vld [vmem:[#allocation2 + $0x60] sm:$0xf] }
  0x1f   : > { %406 = vrot.lane.b32.xlu1 %v383_v5, %s1212_s30  ;;  %404 = vrot.lane.b32.xlu0 %v391_v20, %s1212_s30  ;;  %v475_v37 = vld [vmem:[#allocation2 + $0x48] sm:$0xf]  ;;  %v465_v5 = vld [vmem:[%s1457_s2 + $0x10] sm:$0xff] }
  0x20   : > { %v477_v38 = vld [vmem:[#allocation2 + $0x58] sm:$0xf] }
  0x21   : > { %v479_v56 = vld [vmem:[#allocation2 + $0x68] sm:$0xf] }
  0x22   : > { %v480_v61 = vld [vmem:[#allocation2 + $0x70] sm:$0xf] }
  0x23   : > { %436 = vrot.lane.b32.xlu0 %v435_v22, %s1212_s30  ;;  %920 = vperm.xlu1 %1179, %v917_v24  }
  0x27   : > { %934 = vperm.xlu0 %1180, %v931_v23  }
  0x85   : > { %v399_v26 = vpop.permute.xlu1 %398  ;;  %v395_v27 = vpop.permute.xlu0 %394 }
  0x89   : > { %v401_v28 = vpop.permute.xlu1 %400  ;;  %v397_v29 = vpop.permute.xlu0 %396 }
  0x8a   : > { %v412_v30 = vsel %vm408_vm0, %v399_v26, %v401_v28  ;;  %v410_v31 = vsel %vm408_vm0, %v395_v27, %v397_v29  ;;  %v411_v32 = vsel %vm408_vm0, %v397_v29, %v399_v26 }
  0x8b   : > { %427 = vst [vmem:[#allocation2 + $0x18] sm:$0xf0] %v412_v30  ;;  %425 = vst [vmem:[#allocation2 + $0x8] sm:$0xf0] %v410_v31  ;;  %v953_v30 = vld [vmem:[%s1460_s5] sm:$0xff] }
  0x8c   : > { %426 = vst [vmem:[#allocation2 + $0x10] sm:$0xf0] %v411_v32 }
  0x8d   : > { %v403_v33 = vpop.permute.xlu1 %402  ;;  %v393_v34 = vpop.permute.xlu0 %392 }
  0x8e   : > { %v413_v35 = vsel %vm408_vm0, %v401_v28, %v403_v33  ;;  %v409_v36 = vsel %vm408_vm0, %v393_v34, %v395_v27 }
  0x8f   : > { %428 = vst [vmem:[#allocation2 + $0x20] sm:$0xf0] %v413_v35  ;;  %424 = vst [vmem:[#allocation2] sm:$0xf0] %v409_v36 }
  0x91   : > { %v407_v40 = vpop.permute.xlu1 %406  ;;  %v405_v41 = vpop.permute.xlu0 %404 }
  0x92   : > { %432 = vst.msk [vmem:[#allocation2 + $0x38] sm:$0xf0] %vm431_vm2, %v407_v40  ;;  %v414_v43 = vsel %vm408_vm0, %v403_v33, %v405_v41  ;;  %v415_v44 = vsel %vm408_vm0, %v405_v41, %v407_v40  ;;  %v467_v45 = vld [vmem:[#allocation2 + $0x8] sm:$0xff]  ;;  %v469_v46 = vld [vmem:[#allocation2 + $0x18] sm:$0xff] }
  0x93   : > { %v468_v47 = vld [vmem:[#allocation2 + $0x10] sm:$0xff]  ;;  %429 = vst [vmem:[#allocation2 + $0x28] sm:$0xf0] %v414_v43  ;;  %430 = vst [vmem:[#allocation2 + $0x30] sm:$0xf0] %v415_v44  ;;  %v1122_v48 = vpack.c.bf16 %v475_v37, %v467_v45  ;;  %v1128_v49 = vpack.c.bf16 %v477_v38, %v469_v46 }
  0x94   : > { %v1131_v50 = vpack.c.bf16 %v476_v39, %v468_v47  ;;  %v865_v39 = vlaneseq }
  0x95   : > { %v437_v52 = vpop.permute.xlu0 %436  ;;  %1124 = vmatprep.subr.msk.bf16.mxu0 %vm1316_vm4, %v1122_v48  ;;  %1130 = vmatprep.subr.msk.bf16.mxu1 %vm1316_vm4, %v1128_v49 }
  0x96   : > { %440 = vst.msk [vmem:[#allocation2 + $0x38] sm:$0xf0] %vm439_vm5, %v437_v52  ;;  %1133 = vmatpush1.bf16.msk.msra.mxu1 %vm1316_vm4, %v1131_v50  ;;  %v466_v53 = vld [vmem:[#allocation2] sm:$0xff]  ;;  %v866_v42 = vand.u32 127, %v865_v39 }
  0x97   : > { %v1125_v54 = vpack.c.bf16 %v474_v51, %v466_v53  ;;  %v470_v57 = vld [vmem:[#allocation2 + $0x20] sm:$0xff] }
  0x98   : > { %v1137_v0 = vpack.c.bf16 %v478_v58, %v470_v57  ;;  %vm867_vm7 = vcmp.lt.s32.totalorder %v866_v42, 127  ;;  %vm900_vm8 = vcmp.lt.s32.totalorder %v866_v42, 126 }
  0x99   : > { %1127 = vmatpush1.bf16.msk.msra.mxu0 %vm1316_vm4, %v1125_v54  ;;  %1104 = vmatmul.mubr.msk.f32.vlgmr.msra.gmra.mrb[0].mxu1 %vm482_vm6, %v463_v55 }
  0x9a   : > { %v471_v59 = vld [vmem:[#allocation2 + $0x28] sm:$0xff]  ;;  %v472_v60 = vld [vmem:[#allocation2 + $0x30] sm:$0xff]  ;;  %670 = vmatprep.mubr.f32.mxu1 %v1213_v19 }
  0x9b   : > { %v1134_v62 = vpack.c.bf16 %v479_v56, %v471_v59  ;;  %v1143_v3 = vpack.c.bf16 %v480_v61, %v472_v60 }
  0x9c   : > { %1099 = vmatmul.mubr.msk.f32.vlgmr.msra.gmra.mrb[0].mxu0 %vm482_vm6, %v463_v55 }
  0x9d   : > { %1136 = vmatprep.subr.msk.bf16.mxu0 %vm1316_vm4, %v1134_v62  ;;  %587 = vmatprep.mubr.f32.mxu0 %v1213_v19  ;;  %v473_v2 = vld [vmem:[#allocation2 + $0x38] sm:$0xff] }
  0x9e   : > { %1139 = vmatpush1.bf16.msk.msra.mxu0 %vm1316_vm4, %v1137_v0  ;;  %v1140_v4 = vpack.c.bf16 %v481_v63, %v473_v2  ;;  %1105 = vmatmul.mubr.msk.f32.gmra.mrb[2].mxu1 %vm482_vm6, %v464_v1 }
  0x9f   : > { %676 = vmatprep.mubr.f32.mxu1 %v1213_v19 }
  0xa0   : > { %1100 = vmatmul.mubr.msk.f32.gmra.mrb[2].mxu0 %vm482_vm6, %v464_v1  ;;  %1142 = vmatprep.subr.msk.bf16.mxu1 %vm1316_vm4, %v1140_v4 }
  0xa1   : > { %1145 = vmatpush1.bf16.msk.msra.mxu1 %vm1316_vm4, %v1143_v3  ;;  %593 = vmatprep.mubr.f32.mxu0 %v1213_v19 }
  0xa2   : > { %1106 = vmatmul.mubr.msk.f32.gmra.mrb[4].mxu1 %vm482_vm6, %v465_v5  ;;  %v1394_v32 = vpop.permute.xlu1 %920 }
  0xa3   : > { %830 = vmatprep.mubr.f32.mxu1 %v1213_v19 }
  0xa4   : > { %1101 = vmatmul.mubr.msk.f32.gmra.mrb[4].mxu0 %vm482_vm6, %v465_v5 }
  0xa5   : > { %747 = vmatprep.mubr.f32.mxu0 %v1213_v19 }
  0xa6   : > { %1114 = vmatmul.mubr.msk.f32.vlgmr.msra.gmra.mrb[6].mxu1 %vm482_vm6, %v463_v55  ;;  %v1392_v31 = vpop.permute.xlu0 %934 }
  0xa7   : > { %836 = vmatprep.mubr.f32.mxu1 %v1213_v19 }
  0xa8   : > { %1109 = vmatmul.mubr.msk.f32.vlgmr.msra.gmra.mrb[6].mxu0 %vm482_vm6, %v463_v55 }
  0xa9   : > { %753 = vmatprep.mubr.f32.mxu0 %v1213_v19 }
  0xaa   : > { %1115 = vmatmul.mubr.msk.f32.gmra.mrb[8].mxu1 %vm482_vm6, %v464_v1 }
  0xab   : > { %842 = vmatprep.mubr.f32.mxu1 %v1213_v19 }
  0xac   : > { %1110 = vmatmul.mubr.msk.f32.gmra.mrb[8].mxu0 %vm482_vm6, %v464_v1 }
  0xad   : > { %759 = vmatprep.mubr.f32.mxu0 %v1213_v19 }
  0xae   : > { %1116 = vmatmul.mubr.msk.f32.gmra.mrb[10].mxu1 %vm482_vm6, %v465_v5 }
  0xb0   : > { %1111 = vmatmul.mubr.msk.f32.gmra.mrb[10].mxu0 %vm482_vm6, %v465_v5 }
 0x16c   : > { %v1369_v6 = vpop.f32.mrb[0].mxu1 }
 0x16d   : > { %v1371_v7 = vpop.f32.mrb[1].mxu1 }
 0x16f   : > { %v1373_v8 = vpop.f32.mrb[0].mxu0 }
 0x170   : > { %v1375_v9 = vpop.f32.mrb[1].mxu0 }
 0x171   : > { %v672_v10 = vpop.f32.mrb[2].mxu1 }
 0x172   : > { %v674_v11 = vpop.f32.mrb[3].mxu1 }
 0x173   : > { %v589_v12 = vpop.f32.mrb[2].mxu0 }
 0x174   : > { %849 = vrot.lane.b32.xlu0 %v589_v12, %s1216_s20  ;;  %v591_v13 = vpop.f32.mrb[3].mxu0 }
 0x175   : > { %851 = vrot.lane.b32.xlu1 %v591_v13, %s1216_s20  ;;  %v678_v14 = vpop.f32.mrb[4].mxu1 }
 0x176   : > { %v680_v15 = vpop.f32.mrb[5].mxu1 }
 0x177   : > { %v595_v16 = vpop.f32.mrb[4].mxu0 }
 0x178   : > { %853 = vrot.lane.b32.xlu0 %v672_v10, %s1216_s20  ;;  %v597_v17 = vpop.f32.mrb[5].mxu0 }
 0x179   : > { %855 = vrot.lane.b32.xlu1 %v674_v11, %s1216_s20  ;;  %v1381_v18 = vpop.f32.mrb[6].mxu1 }
 0x17a   : > { %v1383_v19 = vpop.f32.mrb[7].mxu1 }
 0x17b   : > { %v749_v20 = vpop.f32.mrb[6].mxu0 }
 0x17c   : > { %888 = vrot.lane.b32.xlu0 %v678_v14, %s1217_s25  ;;  %v751_v21 = vpop.f32.mrb[7].mxu0 }
 0x17d   : > { %884 = vrot.lane.b32.xlu1 %v595_v16, %s1217_s25  ;;  %v838_v22 = vpop.f32.mrb[8].mxu1 }
 0x17e   : > { %v840_v23 = vpop.f32.mrb[9].mxu1 }
 0x17f   : > { %v755_v24 = vpop.f32.mrb[8].mxu0 }
 0x180   : > { %857 = vrot.lane.b32.xlu0 %v755_v24, %s1216_s20  ;;  %v757_v25 = vpop.f32.mrb[9].mxu0 }
 0x181   : > { %886 = vrot.lane.b32.xlu1 %v597_v17, %s1217_s25  ;;  %v844_v26 = vpop.f32.mrb[10].mxu1 }
 0x182   : > { %v846_v27 = vpop.f32.mrb[11].mxu1 }
 0x183   : > { %v761_v28 = vpop.f32.mrb[10].mxu0 }
 0x184   : > { %861 = vrot.lane.b32.xlu0 %v838_v22, %s1216_s20  ;;  %v763_v29 = vpop.f32.mrb[11].mxu0 }
 0x185   : > { %890 = vrot.lane.b32.xlu1 %v680_v15, %s1217_s25 }
 0x188   : > { %892 = vrot.lane.b32.xlu0 %v761_v28, %s1217_s25 }
 0x189   : > { %859 = vrot.lane.b32.xlu1 %v757_v25, %s1216_s20 }
 0x18c   : > { %896 = vrot.lane.b32.xlu0 %v844_v26, %s1217_s25 }
 0x18d   : > { %863 = vrot.lane.b32.xlu1 %v840_v23, %s1216_s20 }
 0x190   : > { %956 = vperm.xlu0 %1180, %v953_v30  }
 0x191   : > { %894 = vrot.lane.b32.xlu1 %v763_v29, %s1217_s25 }
 0x195   : > { %898 = vrot.lane.b32.xlu1 %v846_v27, %s1217_s25 }
 0x1e6   : > { %v850_v33 = vpop.permute.xlu0 %849 }
 0x1e7   : > { %v852_v34 = vpop.permute.xlu1 %851 }
 0x1e8   : > { %v874_v45 = vsel %vm867_vm7, %v850_v33, %v852_v34 }
 0x1e9   : > { %v876_v51 = vadd.f32 %v874_v45, %v1373_v8 }
 0x1ea   : > { %v854_v35 = vpop.permute.xlu0 %853 }
 0x1eb   : > { %v856_v36 = vpop.permute.xlu1 %855  ;;  %v873_v46 = vsel %vm867_vm7, %v852_v34, %v854_v35 }
 0x1ec   : > { %v872_v49 = vsel %vm867_vm7, %v854_v35, %v856_v36  ;;  %v877_v52 = vadd.f32 %v873_v46, %v1375_v9 }
 0x1ed   : > { %v878_v58 = vadd.f32 %v872_v49, %v1369_v6 }
 0x1ee   : > { %v889_v37 = vpop.permute.xlu0 %888 }
 0x1ef   : > { %v885_v38 = vpop.permute.xlu1 %884 }
 0x1f2   : > { %v858_v40 = vpop.permute.xlu0 %857 }
 0x1f3   : > { %v887_v41 = vpop.permute.xlu1 %886  ;;  %v871_v50 = vsel %vm867_vm7, %v856_v36, %v858_v40 }
 0x1f4   : > { %v906_v53 = vsel %vm900_vm8, %v887_v41, %v889_v37  ;;  %v907_v54 = vsel %vm900_vm8, %v885_v38, %v887_v41  ;;  %v879_v59 = vadd.f32 %v871_v50, %v1371_v7 }
 0x1f5   : > { %v909_v62 = vadd.f32 %v907_v54, %v876_v51  ;;  %v910_v63 = vadd.f32 %v906_v53, %v877_v52 }
 0x1f6   : > { %v862_v43 = vpop.permute.xlu0 %861 }
 0x1f7   : > { %v891_v44 = vpop.permute.xlu1 %890  ;;  %v923_v12 = vmul.f32 %v1394_v32, %v909_v62  ;;  %v924_v13 = vmul.f32 %v1394_v32, %v910_v63 }
 0x1f8   : > { %v905_v55 = vsel %vm900_vm8, %v889_v37, %v891_v44 }
 0x1f9   : > { %v911_v0 = vadd.f32 %v905_v55, %v878_v58  ;;  %v937_v27 = vadd.f32 %v1392_v31, %v923_v12  ;;  %v938_v28 = vadd.f32 %v1392_v31, %v924_v13 }
 0x1fa   : > { %v893_v48 = vpop.permute.xlu0 %892 }
 0x1fb   : > { %v860_v47 = vpop.permute.xlu1 %859  ;;  %v904_v56 = vsel %vm900_vm8, %v891_v44, %v893_v48  ;;  %v925_v14 = vmul.f32 %v1394_v32, %v911_v0  ;;  %vm945_vm9 = vcmp.gt.f32.partialorder %v937_v27, 0.0  ;;  %vm946_vm10 = vcmp.gt.f32.partialorder %v938_v28, 0.0 }
 0x1fc   : > { %v869_v60 = vsel %vm867_vm7, %v860_v47, %v862_v43  ;;  %v870_v61 = vsel %vm867_vm7, %v858_v40, %v860_v47  ;;  %v912_v1 = vadd.f32 %v904_v56, %v879_v59 }
 0x1fd   : > { %v880_v2 = vadd.f32 %v870_v61, %v749_v20  ;;  %v881_v3 = vadd.f32 %v869_v60, %v751_v21 }
 0x1fe   : > { %v897_v4 = vpop.permute.xlu0 %896  ;;  %v926_v15 = vmul.f32 %v1394_v32, %v912_v1 }
 0x1ff   : > { %v864_v57 = vpop.permute.xlu1 %863 }
 0x200   : > { %v868_v8 = vsel %vm867_vm7, %v862_v43, %v864_v57  ;;  %v875_v9 = vsel %vm867_vm7, %v864_v57, %v850_v33 }
 0x201   : > { %v882_v16 = vadd.f32 %v868_v8, %v1381_v18  ;;  %v883_v17 = vadd.f32 %v875_v9, %v1383_v19  ;;  %v939_v18 = vadd.f32 %v1392_v31, %v925_v14  ;;  %v940_v19 = vadd.f32 %v1392_v31, %v926_v15 }
 0x203   : > { %v895_v5 = vpop.permute.xlu1 %894  ;;  %vm947_vm11 = vcmp.gt.f32.partialorder %v939_v18, 0.0  ;;  %vm948_vm12 = vcmp.gt.f32.partialorder %v940_v19, 0.0 }
 0x204   : > { %v902_v6 = vsel %vm900_vm8, %v895_v5, %v897_v4  ;;  %v903_v7 = vsel %vm900_vm8, %v893_v48, %v895_v5 }
 0x205   : > { %v913_v10 = vadd.f32 %v903_v7, %v880_v2  ;;  %v914_v11 = vadd.f32 %v902_v6, %v881_v3 }
 0x207   : > { %v927_v20 = vmul.f32 %v1394_v32, %v913_v10  ;;  %v928_v21 = vmul.f32 %v1394_v32, %v914_v11  ;;  %v899_v22 = vpop.permute.xlu1 %898 }
 0x208   : > { %v901_v23 = vsel %vm900_vm8, %v897_v4, %v899_v22  ;;  %v908_v24 = vsel %vm900_vm8, %v899_v22, %v885_v38 }
 0x209   : > { %v915_v25 = vadd.f32 %v901_v23, %v882_v16  ;;  %v916_v26 = vadd.f32 %v908_v24, %v883_v17  ;;  %v941_v29 = vadd.f32 %v1392_v31, %v927_v20  ;;  %v942_v30 = vadd.f32 %v1392_v31, %v928_v21 }
 0x20b   : > { %v929_v33 = vmul.f32 %v1394_v32, %v915_v25  ;;  %v930_v34 = vmul.f32 %v1394_v32, %v916_v26  ;;  %vm949_vm13 = vcmp.gt.f32.partialorder %v941_v29, 0.0  ;;  %vm950_vm14 = vcmp.gt.f32.partialorder %v942_v30, 0.0 }
 0x20d   : > { %v943_v35 = vadd.f32 %v1392_v31, %v929_v33  ;;  %v944_v36 = vadd.f32 %v1392_v31, %v930_v34 }
 0x20f   : > { %vm951_vm15 = vcmp.gt.f32.partialorder %v943_v35, 0.0  ;;  %vm952_vm0 = vcmp.gt.f32.partialorder %v944_v36, 0.0  ;;  %v957_v37 = vpop.permute.xlu0 %956 }
 0x210   : > { %v959_v38 = vmul.f32 %v957_v37, %v937_v27  ;;  %v960_v32 = vmul.f32 %v957_v37, %v938_v28  ;;  %v961_v39 = vmul.f32 %v957_v37, %v939_v18  ;;  %v962_v40 = vmul.f32 %v957_v37, %v940_v19 }
 0x211   : > { %v963_v41 = vmul.f32 %v957_v37, %v941_v29  ;;  %v964_v31 = vmul.f32 %v957_v37, %v942_v30  ;;  %v965_v42 = vmul.f32 %v957_v37, %v943_v35  ;;  %v966_v43 = vmul.f32 %v957_v37, %v944_v36 }
 0x212   : > { %v967_v44 = vsel %vm945_vm9, %v937_v27, %v959_v38  ;;  %v968_v45 = vsel %vm946_vm10, %v938_v28, %v960_v32  ;;  %v969_v46 = vsel %vm947_vm11, %v939_v18, %v961_v39  ;;  %v970_v47 = vsel %vm948_vm12, %v940_v19, %v962_v40 }
 0x213   : > { %v971_v48 = vsel %vm949_vm13, %v941_v29, %v963_v41  ;;  %v972_v49 = vsel %vm950_vm14, %v942_v30, %v964_v31  ;;  %v973_v50 = vsel %vm951_vm15, %v943_v35, %v965_v42  ;;  %v974_v51 = vsel %vm952_vm0, %v944_v36, %v966_v43  ;;  %975 = vst [vmem:[%s354_s7] sm:$0xff] %v967_v44 }
 0x214   : > { %976 = vst [vmem:[%s354_s7 + $0x8] sm:$0xff] %v968_v45  ;;  %977 = vst [vmem:[%s354_s7 + $0x10] sm:$0xff] %v969_v46 }
 0x215   : > { %978 = vst [vmem:[%s354_s7 + $0x18] sm:$0xff] %v970_v47  ;;  %979 = vst [vmem:[%s354_s7 + $0x20] sm:$0xff] %v971_v48 }
 0x216   : > { %980 = vst [vmem:[%s354_s7 + $0x28] sm:$0xff] %v972_v49  ;;  %981 = vst [vmem:[%s354_s7 + $0x30] sm:$0xff] %v973_v50 }
 0x217   : > { %982 = vst [vmem:[%s354_s7 + $0x38] sm:$0xff] %v974_v51 }
 0x218 PF: > { %s16_s23 = sadd.s32 1, %s1210_s23   ;;  %s1464_s21 = smov %s1206_s22 }
 0x219   : > { %p13_p5 = scmp.ge.s32.totalorder %s16_s23, 4   ;;  %s1465_s22 = smov %s1467_s24 }
 0x21b   :  { %15 = sbr.rel (!%p13_p5) target bundleno = 2 (0x2), region = 77 }

</bundles_post_ra>
